<compile_context>
chip_gen: v7x
topology: tpu7x:2x2x1
jax: 0.10.0
libtpu: 0.0.40
codegen_flags: <defaults>
</compile_context>

<pallas_src>
import functools

import jax
import jax.numpy as jnp
from jax.experimental import pallas as pl
from jax.experimental.pallas import tpu as pltpu


# Per-grid-step pipelined VMEM footprint in units of one sample's x-block:
# double-buffered input (2) + x_all output (2*2) + x_SE output (2)
# + ~2 tile-sized in-kernel temporaries.
_FOOTPRINT_SAMPLES = 10


def _cdiv(a, b):
    return -(-a // b)


def acg_kernel(x_ref, wa_ref, wb_ref, x_all_ref, x_se_ref, *,
               hw_valid, se_on_mxu):
    """One batch-block of the fused ACG forward.

    x_ref:     (Bt, C, HWp)  input
    wa_ref:    SE first 1x1-conv weight; (Cr, C) on the VPU path, (C, Cr) on MXU
    wb_ref:    SE second 1x1-conv weight, transposed: (Cr, C)
    x_all_ref: (Bt, 2C, HWp) = [hard attention | ESRA output]
    x_se_ref:  (Bt, C,  HWp) SE-gated features
    """
    C = x_se_ref.shape[1]
    hwp = x_ref.shape[-1]
    x = x_ref[...]

    # ---- store each output as soon as it is ready (short live ranges) ------
    # Hard attention: sigmoid(x) > 0.5  <=>  x > 0  (no transcendentals; only
    # divergence is the measure-zero band where sigmoid(x) rounds to 0.5).
    x_all_ref[:, 0:C, :] = (x > 0).astype(x_all_ref.dtype)

    # ESRA: every softmax in the PyTorch code is over a size-1 axis, hence
    # identically 1.0, so attn == 3.0 and the output is exactly 3 * x.
    x_all_ref[:, C:2 * C, :] = x * jnp.asarray(3.0, x.dtype)

    # ---- SE block: global avg/max pool -> shared MLP -> sigmoid gate -------
    if hw_valid == hwp:
        avg = jnp.mean(x, axis=-1).astype(jnp.float32)           # (Bt, C)
        mx = jnp.max(x, axis=-1).astype(jnp.float32)             # (Bt, C)
    else:
        # Spatial axis was lane-padded with zeros in the wrapper: zeros are
        # neutral for the sum (divide by the true HW); mask them out of max.
        lane = jax.lax.broadcasted_iota(jnp.int32, x.shape, 2)
        avg = (jnp.sum(x, axis=-1) *
               jnp.asarray(1.0 / hw_valid, x.dtype)).astype(jnp.float32)
        neg = jnp.asarray(-jnp.inf, x.dtype)
        mx = jnp.max(jnp.where(lane < hw_valid, x, neg),
                     axis=-1).astype(jnp.float32)

    if se_on_mxu:
        wa = wa_ref[...].astype(jnp.float32)                     # (C, Cr)
        wb = wb_ref[...].astype(jnp.float32)                     # (Cr, C)
        # w2 has no bias: w2@relu(a) + w2@relu(b) == w2@(relu(a)+relu(b)).
        h = (jnp.maximum(jnp.dot(avg, wa, preferred_element_type=jnp.float32), 0.0)
             + jnp.maximum(jnp.dot(mx, wa, preferred_element_type=jnp.float32), 0.0))
        o = jnp.dot(h, wb, preferred_element_type=jnp.float32)   # (Bt, C)
    else:
        # Tiny hidden width: a (Bt,C)x(C,Cr) matmul is a degenerate MXU op;
        # keep it on the VPU/XLU (broadcast-multiply + lane reduce).
        cr = wa_ref.shape[0]
        o = jnp.zeros(avg.shape, jnp.float32)
        for r in range(cr):                                      # static unroll
            w1r = wa_ref[r:r + 1, :].astype(jnp.float32)         # (1, C)
            h_r = (jnp.maximum(jnp.sum(avg * w1r, axis=-1, keepdims=True), 0.0)
                   + jnp.maximum(jnp.sum(mx * w1r, axis=-1, keepdims=True), 0.0))
            o = o + h_r * wb_ref[r:r + 1, :].astype(jnp.float32)  # (Bt, C)

    gate = jax.nn.sigmoid(o).astype(x.dtype)                     # (Bt, C)
    x_se_ref[...] = x * gate[:, :, None]


def _vmem_budgets():
    """Generation-aware VMEM accounting (one formula for tile choice & limit)."""
    try:
        cap = int(pltpu.get_tpu_info().vmem_capacity_bytes)
    except Exception:
        cap = 64 << 20                       # conservative: v7x per-TC VMEM
    # Per-step double-buffered footprint budget (incl. in-kernel temporaries),
    # with headroom for Mosaic internals and surrounding XLA fusions.
    footprint_budget = min(int(cap * 0.55), 64 << 20)
    limit_cap = min(int(cap * 0.72), 100 << 20)
    return footprint_budget, limit_cap


def _choose_block_batch(B, per_sample_bytes, footprint_budget,
                        target_steps=4, min_block_bytes=1 << 20):
    """Samples per grid step: big blocks, but >= target_steps steps if possible."""
    bt_vmem = max(1, footprint_budget // (_FOOTPRINT_SAMPLES * per_sample_bytes))
    bt_steps = _cdiv(B, target_steps)        # largest bt giving >= target_steps
    bt_floor = max(1, _cdiv(min_block_bytes, per_sample_bytes))
    return max(1, min(bt_vmem, max(bt_steps, bt_floor), B))


@jax.jit
def acg_forward(x, wk, bk, w1, w2):
    """Returns (x_all, x_SE, entory_value1), matching ACG.forward."""
    # ESRA's 1x1 conv (wk, bk) is mathematically dead: every softmax in ESRA
    # is over a size-1 axis (== 1.0), so attn == 3 regardless of K.
    del wk, bk
    B, C, H, W = x.shape
    HW = H * W
    Cr = w1.shape[0]
    itemsize = x.dtype.itemsize

    # Lane-dense spatial axis; pad to a multiple of 128 lanes if needed so
    # every store is an unmasked vst (pad zeros are handled exactly in-kernel).
    HWp = _cdiv(HW, 128) * 128
    x2 = x.reshape(B, C, HW)
    if HWp != HW:
        x2 = jnp.pad(x2, ((0, 0), (0, 0), (0, HWp - HW)))

    # SE weight layout depends on which unit runs the tiny MLP.
    se_on_mxu = Cr > 8
    wa = jnp.transpose(w1) if se_on_mxu else w1      # (C, Cr) or (Cr, C)
    wb = jnp.transpose(w2)                           # (Cr, C)

    per_sample_bytes = C * HWp * itemsize
    footprint_budget, limit_cap = _vmem_budgets()
    bt = _choose_block_batch(B, per_sample_bytes, footprint_budget)
    grid = (_cdiv(B, bt),)
    # TODO(synk): add a spatial (HW-tiled) two-phase fallback for feature maps
    # where a single sample exceeds the per-step VMEM budget (matters first on
    # v7x's 64 MiB VMEM).

    weight_bytes = 2 * 2 * Cr * C * itemsize         # both weights, double-buffered
    vmem_needed = _FOOTPRINT_SAMPLES * bt * per_sample_bytes + weight_bytes
    vmem_limit = int(min(limit_cap, max(16 << 20, int(vmem_needed * 1.3))))

    elems = B * C * HWp
    cost = pl.CostEstimate(
        flops=8 * elems + 2 * B * (2 * C * Cr + C),
        transcendentals=B * C,                        # sigmoid gate
        bytes_accessed=4 * elems * itemsize + 2 * Cr * C * itemsize,
    )

    kernel = functools.partial(acg_kernel, hw_valid=HW, se_on_mxu=se_on_mxu)

    x_all2, x_se2 = pl.pallas_call(
        kernel,
        out_shape=(
            jax.ShapeDtypeStruct((B, 2 * C, HWp), x.dtype),   # x_all
            jax.ShapeDtypeStruct((B, C, HWp), x.dtype),       # x_SE
        ),
        grid=grid,
        in_specs=[
            pl.BlockSpec((bt, C, HWp), lambda b: (b, 0, 0)),  # x
            pl.BlockSpec(wa.shape, lambda b: (0, 0)),         # SE weight 1
            pl.BlockSpec(wb.shape, lambda b: (0, 0)),         # SE weight 2^T
        ],
        out_specs=(
            pl.BlockSpec((bt, 2 * C, HWp), lambda b: (b, 0, 0)),
            pl.BlockSpec((bt, C, HWp), lambda b: (b, 0, 0)),
        ),
        compiler_params=pltpu.CompilerParams(
            dimension_semantics=("parallel",),
            vmem_limit_bytes=vmem_limit),
        cost_estimate=cost,
    )(x2, wa, wb)

    if HWp != HW:
        x_all2 = x_all2[..., :HW]
        x_se2 = x_se2[..., :HW]
    x_all = x_all2.reshape(B, 2 * C, H, W)
    x_se = x_se2.reshape(B, C, H, W)
    # TODO(synk): EntorylAttentionModule is undefined upstream; identity
    # substitution => entory_value1 == x, returned without an extra copy.
    return x_all, x_se, x


def acg_reference(x, wk, bk, w1, w2):
    """Pure-JAX mirror of the PyTorch ACG.forward (for validation)."""
    B, C, H, W = x.shape
    sig = jax.nn.sigmoid(x)
    hard = jnp.where(sig > 0.5, 1.0, 0.0)
    ev = x  # identity entory attention (EntorylAttentionModule undefined)

    x1 = jnp.mean(x, axis=1, keepdims=True)                 # (B,1,H,W)
    x2 = jnp.max(x, axis=1, keepdims=True)                  # (B,1,H,W)
    kmap = jnp.einsum('c,bchw->bhw', wk[:, 0, 0], ev) + bk[0, 0]
    kmap = kmap[:, None]                                    # (B,1,H,W)

    Q = jnp.transpose(x1, (0, 2, 1, 3))                     # (B,H,1,W)
    K = jnp.transpose(kmap, (0, 2, 1, 3))
    T = jnp.transpose(x2, (0, 2, 1, 3))
    V = jnp.transpose(x, (0, 2, 1, 3))                      # (B,H,C,W)
    scale = float(W) ** -0.5
    a1 = jax.nn.softmax(Q @ jnp.swapaxes(K, 2, 3) * scale, axis=-1)
    a2 = jax.nn.softmax(Q @ jnp.swapaxes(T, 2, 3) * scale, axis=-1)
    a3 = jax.nn.softmax(T @ jnp.swapaxes(K, 2, 3) * scale, axis=-1)
    attn = a1 + a2 + a3                                     # (B,H,1,1)
    out = jnp.transpose(attn * V, (0, 2, 1, 3))             # (B,C,H,W)

    avg = jnp.mean(x, axis=(2, 3), keepdims=True)           # (B,C,1,1)
    mx = jnp.max(x, axis=(2, 3), keepdims=True)

    def mlp(v):
        h = jax.nn.relu(jnp.einsum('rc,bcij->brij', w1, v))
        return jnp.einsum('cr,brij->bcij', w2, h)

    gate = jax.nn.sigmoid(mlp(avg) + mlp(mx))
    x_se = gate * x
    x_all = jnp.concatenate([hard, out], axis=1)
    return x_all, x_se, ev


if __name__ == "__main__":
    B, C, H, W = 4, 16, 16, 16         # SE ratio=16 => hidden Cr = C//16 = 1
    Cr = C // 16

    key = jax.random.PRNGKey(0)
    kx, k1, k2, k3, k4 = jax.random.split(key, 5)
    x = jax.random.normal(kx, (B, C, H, W), jnp.float32)
    # ESRA conv2d(C->1, 1x1) weight (1,C,1,1) stored as (C,1,1) + bias (1,)->(1,1)
    wk = jax.random.normal(k1, (C, 1, 1), jnp.float32) * 0.1
    bk = jax.random.normal(k2, (1, 1), jnp.float32) * 0.1
    # SE shared MLP: conv(C->Cr,1x1,no bias), conv(Cr->C,1x1,no bias), squeezed
    w1 = jax.random.normal(k3, (Cr, C), jnp.float32) * 0.1
    w2 = jax.random.normal(k4, (C, Cr), jnp.float32) * 0.1

    x_all, x_se, ev1 = acg_forward(x, wk, bk, w1, w2)
    jax.block_until_ready((x_all, x_se, ev1))

    r_all, r_se, r_ev = acg_reference(x, wk, bk, w1, w2)
    assert x_all.shape == (B, 2 * C, H, W)
    assert x_se.shape == (B, C, H, W)
    assert ev1.shape == (B, C, H, W)
    assert jnp.allclose(x_all, r_all, rtol=1e-4, atol=1e-4)
    assert jnp.allclose(x_se, r_se, rtol=1e-4, atol=1e-4)
    assert jnp.allclose(ev1, r_ev, rtol=1e-4, atol=1e-4)

    print("KERNEL_OK")
</pallas_src>

<mosaic_0001>
module attributes {stable_mosaic.version = 11 : i64} {
  func.func @acg_kernel(%arg0: i32, %arg1: memref<4x16x256xf32, #tpu.memory_space<vmem>>, %arg2: memref<1x16xf32, #tpu.memory_space<vmem>>, %arg3: memref<1x16xf32, #tpu.memory_space<vmem>>, %arg4: memref<4x32x256xf32, #tpu.memory_space<vmem>>, %arg5: memref<4x16x256xf32, #tpu.memory_space<vmem>>) attributes {dimension_semantics = [#tpu.dimension_semantics<parallel>], iteration_bounds = array<i64: 1>, scalar_prefetch = 0 : i64, scratch_operands = 0 : i64, tpu.core_type = #tpu.core_type<tc>, window_params = [{transform_indices = @transform_0, window_bounds = array<i64: 4, 16, 256>}, {pipeline_mode = #tpu.pipeline_mode<synchronous>, transform_indices = @transform_1, window_bounds = array<i64: 1, 16>}, {pipeline_mode = #tpu.pipeline_mode<synchronous>, transform_indices = @transform_2, window_bounds = array<i64: 1, 16>}, {transform_indices = @transform_3, window_bounds = array<i64: 4, 32, 256>}, {transform_indices = @transform_4, window_bounds = array<i64: 4, 16, 256>}]} {
    %c0 = arith.constant 0 : index
    %c0_0 = arith.constant 0 : index
    %c0_1 = arith.constant 0 : index
    %0 = vector.load %arg1[%c0, %c0_0, %c0_1] : memref<4x16x256xf32, #tpu.memory_space<vmem>>, vector<4x16x256xf32>
    %cst = arith.constant 0.000000e+00 : f32
    %1 = vector.broadcast %cst : f32 to vector<4x16x256xf32>
    %2 = arith.cmpf ogt, %0, %1 : vector<4x16x256xf32>
    %3 = arith.extui %2 : vector<4x16x256xi1> to vector<4x16x256xi32>
    %4 = arith.sitofp %3 : vector<4x16x256xi32> to vector<4x16x256xf32>
    %c0_2 = arith.constant 0 : index
    %c0_3 = arith.constant 0 : index
    %c0_4 = arith.constant 0 : index
    %5 = vector.load %arg4[%c0_2, %c0_3, %c0_4] : memref<4x32x256xf32, #tpu.memory_space<vmem>>, vector<4x16x256xf32>
    tpu.vector_store %arg4[%c0_2, %c0_3, %c0_4], %4 {strides = array<i32>} : memref<4x32x256xf32, #tpu.memory_space<vmem>>, vector<4x16x256xf32>,
    %cst_5 = arith.constant 3.000000e+00 : f32
    %6 = vector.broadcast %cst_5 : f32 to vector<4x16x256xf32>
    %7 = arith.mulf %0, %6 : vector<4x16x256xf32>
    %c0_6 = arith.constant 0 : index
    %c16 = arith.constant 16 : index
    %c0_7 = arith.constant 0 : index
    %8 = vector.load %arg4[%c0_6, %c16, %c0_7] : memref<4x32x256xf32, #tpu.memory_space<vmem>>, vector<4x16x256xf32>
    tpu.vector_store %arg4[%c0_6, %c16, %c0_7], %7 {strides = array<i32>} : memref<4x32x256xf32, #tpu.memory_space<vmem>>, vector<4x16x256xf32>,
    %cst_8 = arith.constant dense<0.000000e+00> : vector<4x16xf32>
    %9 = vector.multi_reduction <add>, %0, %cst_8 [2] : vector<4x16x256xf32> to vector<4x16xf32>
    %cst_9 = arith.constant 2.560000e+02 : f32
    %10 = vector.broadcast %cst_9 : f32 to vector<4x16xf32>
    %11 = arith.divf %9, %10 : vector<4x16xf32>
    %cst_10 = arith.constant dense<0xFF800000> : vector<4x16xf32>
    %12 = vector.multi_reduction <maximumf>, %0, %cst_10 [2] : vector<4x16x256xf32> to vector<4x16xf32>
    %cst_11 = arith.constant 0.000000e+00 : f32
    %13 = vector.broadcast %cst_11 : f32 to vector<4x16xf32>
    %c0_12 = arith.constant 0 : index
    %c0_13 = arith.constant 0 : index
    %14 = vector.load %arg2[%c0_12, %c0_13] : memref<1x16xf32, #tpu.memory_space<vmem>>, vector<1x16xf32>
    %15 = vector.broadcast %14 : vector<1x16xf32> to vector<4x16xf32>
    %16 = arith.mulf %11, %15 : vector<4x16xf32>
    %cst_14 = arith.constant dense<0.000000e+00> : vector<4xf32>
    %17 = vector.multi_reduction <add>, %16, %cst_14 [1] : vector<4x16xf32> to vector<4xf32>
    %18 = vector.shape_cast %17 : vector<4xf32> to vector<4x1xf32>
    %cst_15 = arith.constant 0.000000e+00 : f32
    %19 = vector.broadcast %cst_15 : f32 to vector<4x1xf32>
    %20 = arith.maximumf %18, %19 : vector<4x1xf32>
    %21 = vector.broadcast %14 : vector<1x16xf32> to vector<4x16xf32>
    %22 = arith.mulf %12, %21 : vector<4x16xf32>
    %cst_16 = arith.constant dense<0.000000e+00> : vector<4xf32>
    %23 = vector.multi_reduction <add>, %22, %cst_16 [1] : vector<4x16xf32> to vector<4xf32>
    %24 = vector.shape_cast %23 : vector<4xf32> to vector<4x1xf32>
    %cst_17 = arith.constant 0.000000e+00 : f32
    %25 = vector.broadcast %cst_17 : f32 to vector<4x1xf32>
    %26 = arith.maximumf %24, %25 : vector<4x1xf32>
    %27 = arith.addf %20, %26 : vector<4x1xf32>
    %c0_18 = arith.constant 0 : index
    %c0_19 = arith.constant 0 : index
    %28 = vector.load %arg3[%c0_18, %c0_19] : memref<1x16xf32, #tpu.memory_space<vmem>>, vector<1x16xf32>
    %29 = vector.broadcast %27 : vector<4x1xf32> to vector<4x16xf32>
    %30 = vector.broadcast %28 : vector<1x16xf32> to vector<4x16xf32>
    %31 = arith.mulf %29, %30 : vector<4x16xf32>
    %32 = arith.addf %13, %31 : vector<4x16xf32>
    %33 = arith.negf %32 : vector<4x16xf32>
    %34 = math.exp %33 : vector<4x16xf32>
    %cst_20 = arith.constant 1.000000e+00 : f32
    %35 = vector.broadcast %cst_20 : f32 to vector<4x16xf32>
    %36 = arith.addf %35, %34 : vector<4x16xf32>
    %37 = arith.divf %35, %36 : vector<4x16xf32>
    %38 = vector.shape_cast %37 : vector<4x16xf32> to vector<4x16x1xf32>
    %39 = vector.broadcast %38 : vector<4x16x1xf32> to vector<4x16x256xf32>
    %40 = arith.mulf %0, %39 : vector<4x16x256xf32>
    %c0_21 = arith.constant 0 : index
    %c0_22 = arith.constant 0 : index
    %c0_23 = arith.constant 0 : index
    %41 = vector.load %arg5[%c0_21, %c0_22, %c0_23] : memref<4x16x256xf32, #tpu.memory_space<vmem>>, vector<4x16x256xf32>
    tpu.vector_store %arg5[%c0_21, %c0_22, %c0_23], %40 {strides = array<i32>} : memref<4x16x256xf32, #tpu.memory_space<vmem>>, vector<4x16x256xf32>,
    return
  }
  func.func @transform_0(%arg0: i32) -> (i32, i32, i32) {
    %c0_i32 = arith.constant 0 : i32
    %c0_i32_0 = arith.constant 0 : i32
    %c0_i32_1 = arith.constant 0 : i32
    return %arg0, %c0_i32, %c0_i32_0 : i32, i32, i32
  }
  func.func @transform_1(%arg0: i32) -> (i32, i32) {
    %c0_i32 = arith.constant 0 : i32
    %c0_i32_0 = arith.constant 0 : i32
    %c0_i32_1 = arith.constant 0 : i32
    return %c0_i32, %c0_i32_0 : i32, i32
  }
  func.func @transform_2(%arg0: i32) -> (i32, i32) {
    %c0_i32 = arith.constant 0 : i32
    %c0_i32_0 = arith.constant 0 : i32
    %c0_i32_1 = arith.constant 0 : i32
    return %c0_i32, %c0_i32_0 : i32, i32
  }
  func.func @transform_3(%arg0: i32) -> (i32, i32, i32) {
    %c0_i32 = arith.constant 0 : i32
    %c0_i32_0 = arith.constant 0 : i32
    %c0_i32_1 = arith.constant 0 : i32
    return %arg0, %c0_i32, %c0_i32_0 : i32, i32, i32
  }
  func.func @transform_4(%arg0: i32) -> (i32, i32, i32) {
    %c0_i32 = arith.constant 0 : i32
    %c0_i32_0 = arith.constant 0 : i32
    %c0_i32_1 = arith.constant 0 : i32
    return %arg0, %c0_i32, %c0_i32_0 : i32, i32, i32
  }
}

</mosaic_0001>

<bundles_post_ra>
// kernel: acg_forward.1
= control target key start
LH: loop header
LB: loop body
LE: loop exit
PB: predicated region body
PF: predicated region fallthrough
CT: control target
= control target key end

     0   :  { %v503_v6 = vmov 0.0   ;;  %s878_s0 = inlined_call_operand.vmem [shape: f32[4,16,256], index: 0, kind: input, shape index: {}]   ;;  %s879_s3 = inlined_call_operand.vmem [shape: f32[4,32,256], index: 3, kind: output, shape index: {0}]   ;;  %s880_s1 = inlined_call_operand.vmem [shape: f32[1,16], index: 1, kind: input, shape index: {}]   ;;  %s881_s2 = inlined_call_operand.vmem [shape: f32[1,16], index: 2, kind: input, shape index: {}]   ;;  %s882_s4 = inlined_call_operand.vmem [shape: f32[4,16,256], index: 4, kind: output, shape index: {1}]  }
   0x1   :  { %v533_v0 = vld [vmem:[%s878_s0 + $0x20] sm:$0xff]  ;;  %v538_v1 = vld [vmem:[%s878_s0 + $0x28] sm:$0xff]  ;;  %v576_v13 = vld [vmem:[%s878_s0 + $0x30] sm:$0xff] }
   0x2   :  { %v543_v2 = vld [vmem:[%s878_s0] sm:$0xff]  ;;  %vm37_vm0 = vcmp.gt.f32.partialorder %v538_v1, 0.0  ;;  %v101_v3 = vmul.f32 3.0, %v538_v1  ;;  %v134_v4 = vadd.f32 %v538_v1, %v533_v0  ;;  %vm36_vm1 = vcmp.gt.f32.partialorder %v533_v0, 0.0  ;;  %v553_v5 = vld [vmem:[%s878_s0 + $0x8] sm:$0xff]  ;;  %v581_v14 = vld [vmem:[%s878_s0 + $0x38] sm:$0xff] }
   0x3   :  { %v481_v7 = vsel %vm37_vm0, 1.0, %v503_v6  ;;  %v480_v8 = vsel %vm36_vm1, 1.0, %v503_v6  ;;  %v100_v9 = vmul.f32 3.0, %v533_v0  ;;  %vm33_vm2 = vcmp.gt.f32.partialorder %v553_v5, 0.0  ;;  %v596_v17 = vld [vmem:[%s878_s0 + $0x10] sm:$0xff]  ;;  %v601_v18 = vld [vmem:[%s878_s0 + $0x18] sm:$0xff] }
   0x4   :  { %85 = vst [vmem:[%s879_s3 + $0x48] sm:$0xff] %v481_v7  ;;  %117 = vst [vmem:[%s879_s3 + $0x68] sm:$0xff] %v101_v3  ;;  %135 = vadd.xlane.f32.xlu1 %v134_v4  ;;  %v477_v10 = vsel %vm33_vm2, 1.0, %v503_v6  ;;  %v97_v11 = vmul.f32 3.0, %v553_v5  ;;  %v128_v12 = vadd.f32 %v553_v5, %v543_v2  ;;  %vm32_vm3 = vcmp.gt.f32.partialorder %v543_v2, 0.0  ;;  %v630_v25 = vld [vmem:[%s878_s0 + $0x50] sm:$0xff] }
   0x5   :  { %84 = vst [vmem:[%s879_s3 + $0x40] sm:$0xff] %v480_v8  ;;  %116 = vst [vmem:[%s879_s3 + $0x60] sm:$0xff] %v100_v9  ;;  %v476_v15 = vsel %vm32_vm3, 1.0, %v503_v6  ;;  %v96_v16 = vmul.f32 3.0, %v543_v2  ;;  %vm38_vm4 = vcmp.gt.f32.partialorder %v576_v13, 0.0  ;;  %vm39_vm5 = vcmp.gt.f32.partialorder %v581_v14, 0.0 }
   0x6   :  { %81 = vst [vmem:[%s879_s3 + $0x8] sm:$0xff] %v477_v10  ;;  %113 = vst [vmem:[%s879_s3 + $0x28] sm:$0xff] %v97_v11  ;;  %129 = vadd.xlane.f32.xlu0 %v128_v12  ;;  %v482_v19 = vsel %vm38_vm4, 1.0, %v503_v6  ;;  %v483_v20 = vsel %vm39_vm5, 1.0, %v503_v6  ;;  %v102_v21 = vmul.f32 3.0, %v576_v13  ;;  %v103_v22 = vmul.f32 3.0, %v581_v14 }
   0x7   :  { %80 = vst [vmem:[%s879_s3] sm:$0xff] %v476_v15  ;;  %112 = vst [vmem:[%s879_s3 + $0x20] sm:$0xff] %v96_v16  ;;  %v137_v23 = vadd.f32 %v581_v14, %v576_v13  ;;  %vm34_vm6 = vcmp.gt.f32.partialorder %v596_v17, 0.0  ;;  %vm35_vm7 = vcmp.gt.f32.partialorder %v601_v18, 0.0  ;;  %v98_v24 = vmul.f32 3.0, %v596_v17  ;;  %v635_v26 = vld [vmem:[%s878_s0 + $0x58] sm:$0xff]  ;;  %v664_v33 = vld [vmem:[%s878_s0 + $0x40] sm:$0xff] }
   0x8   :  { %86 = vst [vmem:[%s879_s3 + $0x50] sm:$0xff] %v482_v19  ;;  %87 = vst [vmem:[%s879_s3 + $0x58] sm:$0xff] %v483_v20  ;;  %v478_v27 = vsel %vm34_vm6, 1.0, %v503_v6  ;;  %v479_v28 = vsel %vm35_vm7, 1.0, %v503_v6  ;;  %v99_v29 = vmul.f32 3.0, %v601_v18  ;;  %v131_v30 = vadd.f32 %v601_v18, %v596_v17  ;;  %v669_v34 = vld [vmem:[%s878_s0 + $0x48] sm:$0xff] }
   0x9   :  { %118 = vst [vmem:[%s879_s3 + $0x70] sm:$0xff] %v102_v21  ;;  %119 = vst [vmem:[%s879_s3 + $0x78] sm:$0xff] %v103_v22  ;;  %138 = vadd.xlane.f32.xlu1 %v137_v23  ;;  %vm42_vm8 = vcmp.gt.f32.partialorder %v630_v25, 0.0  ;;  %vm43_vm9 = vcmp.gt.f32.partialorder %v635_v26, 0.0  ;;  %v106_v31 = vmul.f32 3.0, %v630_v25  ;;  %v107_v32 = vmul.f32 3.0, %v635_v26 }
   0xa   :  { %82 = vst [vmem:[%s879_s3 + $0x10] sm:$0xff] %v478_v27  ;;  %83 = vst [vmem:[%s879_s3 + $0x18] sm:$0xff] %v479_v28  ;;  %132 = vadd.xlane.f32.xlu0 %v131_v30  ;;  %v486_v35 = vsel %vm42_vm8, 1.0, %v503_v6  ;;  %v487_v36 = vsel %vm43_vm9, 1.0, %v503_v6  ;;  %v143_v37 = vadd.f32 %v635_v26, %v630_v25  ;;  %vm40_vm10 = vcmp.gt.f32.partialorder %v664_v33, 0.0  ;;  %v698_v41 = vld [vmem:[%s878_s0 + $0x70] sm:$0xff] }
   0xb   :  { %114 = vst [vmem:[%s879_s3 + $0x30] sm:$0xff] %v98_v24  ;;  %115 = vst [vmem:[%s879_s3 + $0x38] sm:$0xff] %v99_v29  ;;  %vm41_vm11 = vcmp.gt.f32.partialorder %v669_v34, 0.0  ;;  %v484_v38 = vsel %vm40_vm10, 1.0, %v503_v6  ;;  %v104_v39 = vmul.f32 3.0, %v664_v33  ;;  %v105_v40 = vmul.f32 3.0, %v669_v34 }
   0xc   :  { %90 = vst [vmem:[%s879_s3 + $0x90] sm:$0xff] %v486_v35  ;;  %91 = vst [vmem:[%s879_s3 + $0x98] sm:$0xff] %v487_v36  ;;  %v703_v42 = vld [vmem:[%s878_s0 + $0x78] sm:$0xff]  ;;  %v485_v43 = vsel %vm41_vm11, 1.0, %v503_v6  ;;  %v140_v44 = vadd.f32 %v669_v34, %v664_v33  ;;  %vm46_vm12 = vcmp.gt.f32.partialorder %v698_v41, 0.0  ;;  %v716_v45 = vld [vmem:[%s878_s0 + $0x60] sm:$0xff]  ;;  %v164_v57 = vmax.f32 %v596_v17, %v601_v18 }
   0xd   :  { %122 = vst [vmem:[%s879_s3 + $0xb0] sm:$0xff] %v106_v31  ;;  %123 = vst [vmem:[%s879_s3 + $0xb8] sm:$0xff] %v107_v32  ;;  %vm47_vm13 = vcmp.gt.f32.partialorder %v703_v42, 0.0  ;;  %v721_v46 = vld [vmem:[%s878_s0 + $0x68] sm:$0xff]  ;;  %144 = vadd.xlane.f32.xlu1 %v143_v37  ;;  %v490_v47 = vsel %vm46_vm12, 1.0, %v503_v6  ;;  %v110_v49 = vmul.f32 3.0, %v698_v41  ;;  %v149_v51 = vadd.f32 %v703_v42, %v698_v41 }
   0xe   :  { %88 = vst [vmem:[%s879_s3 + $0x80] sm:$0xff] %v484_v38  ;;  %89 = vst [vmem:[%s879_s3 + $0x88] sm:$0xff] %v485_v43  ;;  %v491_v48 = vsel %vm47_vm13, 1.0, %v503_v6  ;;  %v111_v50 = vmul.f32 3.0, %v703_v42  ;;  %141 = vadd.xlane.f32.xlu0 %v140_v44  ;;  %vm44_vm14 = vcmp.gt.f32.partialorder %v716_v45, 0.0  ;;  %vm45_vm15 = vcmp.gt.f32.partialorder %v721_v46, 0.0 }
   0xf   :  { %120 = vst [vmem:[%s879_s3 + $0xa0] sm:$0xff] %v104_v39  ;;  %121 = vst [vmem:[%s879_s3 + $0xa8] sm:$0xff] %v105_v40  ;;  %v108_v52 = vmul.f32 3.0, %v716_v45  ;;  %v488_v53 = vsel %vm44_vm14, 1.0, %v503_v6  ;;  %v489_v54 = vsel %vm45_vm15, 1.0, %v503_v6  ;;  %v109_v55 = vmul.f32 3.0, %v721_v46 }
  0x10   :  { %94 = vst [vmem:[%s879_s3 + $0xd0] sm:$0xff] %v490_v47  ;;  %95 = vst [vmem:[%s879_s3 + $0xd8] sm:$0xff] %v491_v48  ;;  %v146_v56 = vadd.f32 %v721_v46, %v716_v45  ;;  %v161_v58 = vmax.f32 %v543_v2, %v553_v5  ;;  %v170_v59 = vmax.f32 %v576_v13, %v581_v14  ;;  %v492_v4 = vld [vmem:[%s880_s1] ss:$0 sm:$0xff]  ;;  %v504_v6 = vmov 0  }
  0x11   :  { %126 = vst [vmem:[%s879_s3 + $0xf0] sm:$0xff] %v110_v49  ;;  %127 = vst [vmem:[%s879_s3 + $0xf8] sm:$0xff] %v111_v50  ;;  %150 = vadd.xlane.f32.xlu1 %v149_v51  ;;  %v167_v60 = vmax.f32 %v533_v0, %v538_v1  ;;  %v176_v61 = vmax.f32 %v630_v25, %v635_v26  ;;  %v173_v62 = vmax.f32 %v664_v33, %v669_v34  ;;  %vm251_vm0 = vcmask 130112  }
  0x12   :  { %92 = vst [vmem:[%s879_s3 + $0xc0] sm:$0xff] %v488_v53  ;;  %93 = vst [vmem:[%s879_s3 + $0xc8] sm:$0xff] %v489_v54  ;;  %147 = vadd.xlane.f32.xlu0 %v146_v56  ;;  %v182_v63 = vmax.f32 %v698_v41, %v703_v42  ;;  %v179_v3 = vmax.f32 %v716_v45, %v721_v46  ;;  %497 = vset.pattern.permute.xlu1 %v504_v6  ;;  %vm280_vm1 = vcmask 1041409   ;;  %vm284_vm2 = vcmask 1043459  }
  0x13   :  { %124 = vst [vmem:[%s879_s3 + $0xe0] sm:$0xff] %v108_v52  ;;  %125 = vst [vmem:[%s879_s3 + $0xe8] sm:$0xff] %v109_v55  ;;  %498 = vset.pattern.permute.xlu0 %v504_v6  ;;  %vm282_vm3 = vcmask 1042434   ;;  %vm287_vm4 = vcmask 125952  }
  0x15   :  { %165 = vmax.xlane.f32.xlu1 %v164_v57 }
  0x16   :  { %162 = vmax.xlane.f32.xlu0 %v161_v58 }
  0x19   :  { %171 = vmax.xlane.f32.xlu1 %v170_v59 }
  0x1a   :  { %168 = vmax.xlane.f32.xlu0 %v167_v60 }
  0x1d   :  { %177 = vmax.xlane.f32.xlu1 %v176_v61 }
  0x1e   :  { %174 = vmax.xlane.f32.xlu0 %v173_v62 }
  0x21   :  { %183 = vmax.xlane.f32.xlu1 %v182_v63 }
  0x22   :  { %180 = vmax.xlane.f32.xlu0 %v179_v3 }
  0x32   :  { %196 = vbcast.lane.b32.xlu1 %v492_v4, 264 }
  0x38   :  { %192 = vbcast.lane.b32.xlu0 %v492_v4, 256 }
  0x91   :  { %v136_v7 = vpop.xlane.xlu1 %135 }
  0x92   :  { %v155_v39 = vmul.f32 0.00390625, %v136_v7  ;;  %v240_v7 = vlaneseq }
  0x93   :  { %v130_v8 = vpop.xlane.xlu0 %129 }
  0x94   :  { %v153_v40 = vmul.f32 0.00390625, %v130_v8 }
  0x96   :  { %v139_v9 = vpop.xlane.xlu1 %138 }
  0x97   :  { %v133_v10 = vpop.xlane.xlu0 %132  ;;  %v156_v52 = vmul.f32 0.00390625, %v139_v9 }
  0x98   :  { %v154_v48 = vmul.f32 0.00390625, %v133_v10  ;;  %v241_v10 = vand.u32 127, %v240_v7 }
  0x9a   :  { %v145_v11 = vpop.xlane.xlu1 %144 }
  0x9b   :  { %v142_v12 = vpop.xlane.xlu0 %141  ;;  %v158_v47 = vmul.f32 0.00390625, %v145_v11 }
  0x9c   :  { %v157_v55 = vmul.f32 0.00390625, %v142_v12  ;;  %v789_v12 = vshrl.u32 %v240_v7, 7 }
  0x9e   :  { %v151_v15 = vpop.xlane.xlu1 %150 }
  0x9f   :  { %v148_v16 = vpop.xlane.xlu0 %147  ;;  %v160_v51 = vmul.f32 0.00390625, %v151_v15  ;;  %v246_v15 = vadd.s32 4294967288, %v241_v10 }
  0xa0   :  { %v159_v58 = vmul.f32 0.00390625, %v148_v16 }
  0xa2   :  { %v166_v19 = vpop.xlane.xlu1 %165 }
  0xa3   :  { %v163_v20 = vpop.xlane.xlu0 %162 }
  0xa6   :  { %v172_v21 = vpop.xlane.xlu1 %171 }
  0xa7   :  { %v169_v22 = vpop.xlane.xlu0 %168 }
  0xaa   :  { %v178_v23 = vpop.xlane.xlu1 %177 }
  0xab   :  { %v175_v24 = vpop.xlane.xlu0 %174 }
  0xae   :  { %v184_v27 = vpop.xlane.xlu1 %183 }
  0xaf   :  { %v181_v28 = vpop.xlane.xlu0 %180 }
  0xb2   :  { %v197_v29 = vpop.permute.xlu1 %196 }
  0xb3   :  { %v193_v30 = vpop.permute.xlu0 %192  ;;  %v293_v31 = vmul.f32 %v197_v29, %v166_v19  ;;  %v295_v35 = vmul.f32 %v197_v29, %v172_v21  ;;  %v297_v37 = vmul.f32 %v197_v29, %v178_v23  ;;  %v205_v49 = vmul.f32 %v197_v29, %v158_v47 }
  0xb4   :  { %v292_v32 = vmul.f32 %v193_v30, %v163_v20  ;;  %v294_v36 = vmul.f32 %v193_v30, %v169_v22  ;;  %v296_v38 = vmul.f32 %v193_v30, %v175_v24  ;;  %v202_v43 = vmul.f32 %v193_v30, %v155_v39 }
  0xb5   :  { %312 = vperm.xlu0 %498, %v293_v31   ;;  %v200_v44 = vmul.f32 %v193_v30, %v153_v40  ;;  %v201_v50 = vmul.f32 %v197_v29, %v154_v48  ;;  %v207_v53 = vmul.f32 %v197_v29, %v160_v51  ;;  %v203_v54 = vmul.f32 %v197_v29, %v156_v52 }
  0xb6   :  { %309 = vperm.xlu1 %497, %v292_v32   ;;  %v299_v56 = vmul.f32 %v197_v29, %v184_v27  ;;  %v204_v57 = vmul.f32 %v193_v30, %v157_v55  ;;  %v206_v59 = vmul.f32 %v193_v30, %v159_v58  ;;  %v298_v60 = vmul.f32 %v193_v30, %v181_v28 }
  0xb7   :  { %v249_v20 = vsub.s32 %v246_v15, %v789_v12  ;;  %v244_v21 = vsub.s32 %v241_v10, %v789_v12 }
  0xb9   :  { %318 = vperm.xlu0 %498, %v295_v35  }
  0xba   :  { %315 = vperm.xlu1 %497, %v294_v36  }
  0xbd   :  { %324 = vperm.xlu0 %498, %v297_v37  }
  0xbe   :  { %321 = vperm.xlu1 %497, %v296_v38  }
  0xc1   :  { %223 = vperm.xlu0 %498, %v202_v43  }
  0xc2   :  { %217 = vperm.xlu1 %497, %v200_v44  }
  0xc5   :  { %232 = vperm.xlu0 %498, %v205_v49  }
  0xc6   :  { %220 = vperm.xlu1 %497, %v201_v50  }
  0xc9   :  { %238 = vperm.xlu0 %498, %v207_v53  }
  0xca   :  { %226 = vperm.xlu1 %497, %v203_v54  }
  0xcd   :  { %330 = vperm.xlu0 %498, %v299_v56  }
  0xce   :  { %229 = vperm.xlu1 %497, %v204_v57  }
  0xd2   :  { %235 = vperm.xlu1 %497, %v206_v59  }
  0xd6   :  { %327 = vperm.xlu1 %497, %v298_v60  }
 0x134   :  { %v313_v61 = vpop.permute.xlu0 %312 }
 0x135   :  { %v310_v62 = vpop.permute.xlu1 %309  ;;  %v339_v37 = vrot.slane %v313_v61, %v249_v20 }
 0x136   :  { %v335_v44 = vrot.slane %v310_v62, %v244_v21 }
 0x138   :  { %v319_v63 = vpop.permute.xlu0 %318  ;;  %v340_v58 = vsel %vm251_vm0, %v339_v37, %v335_v44 }
 0x139   :  { %v316_v3 = vpop.permute.xlu1 %315  ;;  %v348_v32 = vrot.slane %v319_v63, %v249_v20 }
 0x13a   :  { %v344_v31 = vrot.slane %v316_v3, %v244_v21 }
 0x13c   :  { %v325_v4 = vpop.permute.xlu0 %324  ;;  %v349_v52 = vsel %vm251_vm0, %v348_v32, %v344_v31  ;;  %v427_v31 = vsub.s32 3, %v789_v12 }
 0x13d   :  { %v322_v6 = vpop.permute.xlu1 %321  ;;  %v357_v39 = vrot.slane %v325_v4, %v249_v20  ;;  %v368_v62 = vsel %vm280_vm1, %v349_v52, %v340_v58 }
 0x13e   :  { %v353_v38 = vrot.slane %v322_v6, %v244_v21 }
 0x140   :  { %v224_v9 = vpop.permute.xlu0 %223  ;;  %v358_v55 = vsel %vm251_vm0, %v357_v39, %v353_v38 }
 0x141   :  { %v218_v8 = vpop.permute.xlu1 %217  ;;  %v256_v27 = vrot.slane %v224_v9, %v244_v21  ;;  %v369_v3 = vsel %vm282_vm3, %v358_v55, %v368_v62 }
 0x142   :  { %v245_v35 = vrot.slane %v218_v8, %v244_v21 }
 0x144   :  { %v233_v16 = vpop.permute.xlu0 %232 }
 0x145   :  { %v221_v11 = vpop.permute.xlu1 %220  ;;  %v269_v30 = vrot.slane %v233_v16, %v249_v20 }
 0x146   :  { %v250_v28 = vrot.slane %v221_v11, %v249_v20  ;;  %v493_v11 = vld [vmem:[%s881_s2] ss:$0 sm:$0xff] }
 0x148   :  { %v239_v23 = vpop.permute.xlu0 %238  ;;  %v252_v47 = vsel %vm251_vm0, %v250_v28, %v245_v35 }
 0x149   :  { %v227_v19 = vpop.permute.xlu1 %226  ;;  %v278_v48 = vrot.slane %v239_v23, %v249_v20 }
 0x14a   :  { %v260_v22 = vrot.slane %v227_v19, %v249_v20 }
 0x14c   :  { %v261_v36 = vsel %vm251_vm0, %v260_v22, %v256_v27  ;;  %v331_v50 = vpop.permute.xlu0 %330  ;;  %v394_v22 = vsub.s32 0, %v789_v12  ;;  %v405_v27 = vsub.s32 1, %v789_v12 }
 0x14d   :  { %v230_v24 = vpop.permute.xlu1 %229  ;;  %v281_v51 = vsel %vm280_vm1, %v261_v36, %v252_v47  ;;  %v366_v59 = vrot.slane %v331_v50, %v249_v20 }
 0x14e   :  { %v265_v29 = vrot.slane %v230_v24, %v244_v21 }
 0x150   :  { %v270_v40 = vsel %vm251_vm0, %v269_v30, %v265_v29  ;;  %v416_v29 = vsub.s32 2, %v789_v12 }
 0x151   :  { %v236_v43 = vpop.permute.xlu1 %235  ;;  %v283_v54 = vsel %vm282_vm3, %v270_v40, %v281_v51 }
 0x152   :  { %v274_v49 = vrot.slane %v236_v43, %v244_v21 }
 0x154   :  { %v279_v53 = vsel %vm251_vm0, %v278_v48, %v274_v49 }
 0x155   :  { %v328_v56 = vpop.permute.xlu1 %327  ;;  %v285_v57 = vsel %vm284_vm2, %v279_v53, %v283_v54 }
 0x156   :  { %v362_v60 = vrot.slane %v328_v56, %v244_v21  ;;  %v288_v61 = vsel %vm287_vm4, %v285_v57, 0.0 }
 0x157   :  { %289 = vadd.xlane.f32.xlu1 %v288_v61 }
 0x158   :  { %v367_v63 = vsel %vm251_vm0, %v366_v59, %v362_v60 }
 0x159   :  { %v370_v4 = vsel %vm284_vm2, %v367_v63, %v369_v3 }
 0x15a   :  { %v372_v6 = vsel %vm287_vm4, %v370_v4, 0.0 }
 0x15b   :  { %373 = vadd.xlane.f32.xlu0 %v372_v6 }
 0x1e4   :  { %v290_v7 = vpop.xlane.xlu1 %289 }
 0x1e5   :  { %v291_v9 = vmax.f32 %v290_v7, 0.0 }
 0x1e8   :  { %v374_v8 = vpop.xlane.xlu0 %373 }
 0x1e9   :  { %v375_v10 = vmax.f32 %v374_v8, 0.0 }
 0x1eb   :  { %v376_v15 = vadd.f32 %v375_v10, %v291_v9 }
 0x1ed   :  { %v384_v16 = vmul.f32 %v493_v11, %v376_v15 }
 0x1ef   :  { %v494_v19 = vmul.f32 -1.442695, %v384_v16 }
 0x1f1   :  { %499 = vpow2.f32 %v494_v19 }
 0x1fb   :  { %v500_v20 = vpop.eup %499 }
 0x1fc   :  { %v389_v21 = vadd.f32 1.0, %v500_v20 }
 0x1fe   :  { %501 = vrcp.f32 %v389_v21 }
 0x208   :  { %v502_v23 = vpop.eup %501 }
 0x209   :  { %v395_v24 = vrot.slane %v502_v23, %v394_v22  ;;  %v406_v28 = vrot.slane %v502_v23, %v405_v27  ;;  %v417_v30 = vrot.slane %v502_v23, %v416_v29  ;;  %v428_v32 = vrot.slane %v502_v23, %v427_v31 }
 0x20b   :  { %401 = vbcast.lane.b32.xlu1 %v395_v24, 264  ;;  %397 = vbcast.lane.b32.xlu0 %v395_v24, 256 }
 0x20f   :  { %408 = vbcast.lane.b32.xlu1 %v406_v28, 256  ;;  %412 = vbcast.lane.b32.xlu0 %v406_v28, 264 }
 0x213   :  { %419 = vbcast.lane.b32.xlu1 %v417_v30, 256  ;;  %423 = vbcast.lane.b32.xlu0 %v417_v30, 264 }
 0x217   :  { %430 = vbcast.lane.b32.xlu1 %v428_v32, 256  ;;  %434 = vbcast.lane.b32.xlu0 %v428_v32, 264 }
 0x27d   :  { %v402_v35 = vpop.permute.xlu1 %401  ;;  %v398_v36 = vpop.permute.xlu0 %397 }
 0x27e   :  { %v438_v37 = vmul.f32 %v402_v35, %v596_v17  ;;  %v439_v38 = vmul.f32 %v402_v35, %v601_v18  ;;  %v436_v39 = vmul.f32 %v398_v36, %v543_v2  ;;  %v437_v40 = vmul.f32 %v398_v36, %v553_v5 }
 0x280   :  { %454 = vst [vmem:[%s882_s4 + $0x10] sm:$0xff] %v438_v37  ;;  %455 = vst [vmem:[%s882_s4 + $0x18] sm:$0xff] %v439_v38 }
 0x281   :  { %452 = vst [vmem:[%s882_s4] sm:$0xff] %v436_v39  ;;  %453 = vst [vmem:[%s882_s4 + $0x8] sm:$0xff] %v437_v40  ;;  %v409_v17 = vpop.permute.xlu1 %408  ;;  %v413_v2 = vpop.permute.xlu0 %412 }
 0x282   :  { %v440_v5 = vmul.f32 %v409_v17, %v533_v0  ;;  %v441_v18 = vmul.f32 %v409_v17, %v538_v1  ;;  %v442_v12 = vmul.f32 %v413_v2, %v576_v13  ;;  %v443_v43 = vmul.f32 %v413_v2, %v581_v14 }
 0x284   :  { %456 = vst [vmem:[%s882_s4 + $0x20] sm:$0xff] %v440_v5  ;;  %457 = vst [vmem:[%s882_s4 + $0x28] sm:$0xff] %v441_v18 }
 0x285   :  { %458 = vst [vmem:[%s882_s4 + $0x30] sm:$0xff] %v442_v12  ;;  %459 = vst [vmem:[%s882_s4 + $0x38] sm:$0xff] %v443_v43  ;;  %v420_v0 = vpop.permute.xlu1 %419  ;;  %v424_v1 = vpop.permute.xlu0 %423 }
 0x286   :  { %v444_v13 = vmul.f32 %v420_v0, %v664_v33  ;;  %v445_v14 = vmul.f32 %v420_v0, %v669_v34  ;;  %v446_v44 = vmul.f32 %v424_v1, %v630_v25  ;;  %v447_v47 = vmul.f32 %v424_v1, %v635_v26 }
 0x288   :  { %460 = vst [vmem:[%s882_s4 + $0x40] sm:$0xff] %v444_v13  ;;  %461 = vst [vmem:[%s882_s4 + $0x48] sm:$0xff] %v445_v14 }
 0x289   :  { %462 = vst [vmem:[%s882_s4 + $0x50] sm:$0xff] %v446_v44  ;;  %463 = vst [vmem:[%s882_s4 + $0x58] sm:$0xff] %v447_v47  ;;  %v431_v33 = vpop.permute.xlu1 %430  ;;  %v435_v25 = vpop.permute.xlu0 %434 }
 0x28a   :  { %v448_v26 = vmul.f32 %v431_v33, %v716_v45  ;;  %v449_v34 = vmul.f32 %v431_v33, %v721_v46  ;;  %v450_v48 = vmul.f32 %v435_v25, %v698_v41  ;;  %v451_v49 = vmul.f32 %v435_v25, %v703_v42 }
 0x28c   :  { %464 = vst [vmem:[%s882_s4 + $0x60] sm:$0xff] %v448_v26  ;;  %465 = vst [vmem:[%s882_s4 + $0x68] sm:$0xff] %v449_v34 }
 0x28d   :  { %466 = vst [vmem:[%s882_s4 + $0x70] sm:$0xff] %v450_v48  ;;  %467 = vst [vmem:[%s882_s4 + $0x78] sm:$0xff] %v451_v49 }

</bundles_post_ra>
